<compile_context>
chip_gen: v7x
topology: tpu7x:2x2x1
jax: 0.10.0
libtpu: 0.0.40
codegen_flags: <defaults>
</compile_context>

<pallas_src>
import functools

import jax
import jax.numpy as jnp
import numpy as np
from jax.experimental import pallas as pl
from jax.experimental.pallas import tpu as pltpu

# Used only to generate realistic multi-hot test targets (9 columns).
COMB_NO_VOID_SEQUENCE_MAP = np.array(
    [
        [1, 0, 0, 0, 0, 0, 0, 0, 1],
        [1, 0, 1, 0, 0, 0, 0, 0, 1],
        [1, 0, 1, 0, 1, 0, 0, 0, 1],
        [1, 0, 1, 0, 0, 1, 0, 0, 1],
        [1, 0, 0, 0, 0, 0, 1, 0, 1],
        [1, 0, 0, 0, 0, 0, 0, 1, 0],
        [1, 0, 1, 0, 0, 0, 0, 1, 0],
        [1, 0, 1, 0, 1, 0, 0, 1, 0],
        [1, 0, 1, 0, 0, 1, 0, 1, 0],
        [1, 0, 0, 0, 0, 0, 1, 1, 0],
        [0, 1, 0, 0, 0, 0, 0, 0, 1],
        [0, 1, 1, 0, 0, 0, 0, 0, 1],
        [0, 1, 1, 0, 1, 0, 0, 0, 1],
        [0, 1, 1, 0, 0, 1, 0, 0, 1],
        [0, 1, 0, 0, 0, 0, 1, 0, 1],
        [0, 1, 0, 0, 0, 0, 0, 1, 0],
        [0, 1, 1, 0, 0, 0, 0, 1, 0],
        [0, 1, 1, 0, 1, 0, 0, 1, 0],
        [0, 1, 1, 0, 0, 1, 0, 1, 0],
        [0, 1, 0, 0, 0, 0, 1, 1, 0],
    ],
    dtype=np.float32,
)

TARGET_DIM = 9            # multi-hot target width
NUM_LOGIT_ROWS = 10       # stroke, player, hand, point(3), serve(4)
USED_ROWS = NUM_LOGIT_ROWS + TARGET_DIM   # 19
PACK_ROWS = 24            # 19 used rows padded to a multiple of 8
ROW_TGT = NUM_LOGIT_ROWS  # first target row
NEG_PAD = -1.0e4          # stroke-logit padding: softplus(-1e4) == 0 in f32


def _softplus(z):
    # numerically stable log(1 + exp(z))
    return jnp.maximum(z, 0.0) + jnp.log1p(jnp.exp(-jnp.abs(z)))


def _loss1_kernel(x_ref, out_ref, *, pos_weight, tile):
    """x_ref: (PACK_ROWS, tile) packed slab; out_ref: (1, 128) partial sum."""
    # ---- unpack rows (all values lane-dense: samples on the lane axis) -----
    sph = x_ref[pl.ds(0, 3), :]              # (3, tile) stroke/player/hand logits
    pt = x_ref[pl.ds(3, 3), :]               # (3, tile) point logits
    sv = x_ref[pl.ds(6, 4), :]               # (4, tile) serve logits
    y = x_ref[pl.ds(ROW_TGT, TARGET_DIM), :]  # (9, tile) multi-hot targets

    # ---- adapt_target_to_output_1_no_void (2 batched compares) -------------
    y_eq0 = (y == 0.0).astype(jnp.float32)   # (9, tile)
    y_eq1 = (y == 1.0).astype(jnp.float32)   # (9, tile)
    ys = (jnp.sum(y, axis=0, keepdims=True) > 0.0).astype(jnp.float32)  # stroke
    yp = y_eq0[0:1, :]                       # player target
    yh = y_eq0[7:8, :]                       # hand target
    t2 = y_eq1[2:3, :]
    t3 = y_eq1[3:4, :]
    t4 = y_eq1[4:5, :]
    t5 = y_eq1[5:6, :]
    t6 = y_eq1[6:7, :]

    # ---- BCE-with-logits heads (one batched softplus on 3 rows) ------------
    sp3 = _softplus(sph)                     # (3, tile), single EUP pass
    # y*sp(-x) + (1-y)*sp(x) == sp(x) - y*x  (exact identity)
    if pos_weight == 1.0:
        bce_stroke = sp3[0:1, :] - ys * sph[0:1, :]
    else:
        s = sph[0:1, :]
        bce_stroke = pos_weight * ys * _softplus(-s) + (1.0 - ys) * sp3[0:1, :]
    bce_ph = (sp3[1:2, :] - yp * sph[1:2, :]) + (sp3[2:3, :] - yh * sph[2:3, :])

    # ---- CrossEntropy over 3 point classes ----------------------------------
    m_pt = jnp.max(pt, axis=0, keepdims=True)
    lse_pt = m_pt + jnp.log(jnp.sum(jnp.exp(pt - m_pt), axis=0, keepdims=True))
    o0 = t4
    o1 = (1.0 - t4) * t5
    o2 = (1.0 - t4) * (1.0 - t5)
    tl_pt = o0 * pt[0:1, :] + o1 * pt[1:2, :] + o2 * pt[2:3, :]
    ce_pt = lse_pt - tl_pt

    # ---- CrossEntropy over 4 serve classes ----------------------------------
    m_sv = jnp.max(sv, axis=0, keepdims=True)
    lse_sv = m_sv + jnp.log(jnp.sum(jnp.exp(sv - m_sv), axis=0, keepdims=True))
    s0 = t2
    s1 = (1.0 - t2) * t3
    s2 = (1.0 - t2) * (1.0 - t3) * t6
    s3 = (1.0 - t2) * (1.0 - t3) * (1.0 - t6)
    tl_sv = s0 * sv[0:1, :] + s1 * sv[1:2, :] + s2 * sv[2:3, :] + s3 * sv[3:4, :]
    ce_sv = lse_sv - tl_sv

    # ---- per-sample loss ----------------------------------------------------
    # Padded columns (stroke logit = -1e4, targets = 0) contribute exactly 0:
    # softplus(-1e4) == 0 and ys == 0, so no iota/compare mask is needed.
    sample = bce_stroke + ys * (bce_ph + ce_pt + ce_sv)   # (1, tile)

    # ---- fold the tile into one lane-dense (1, 128) partial-sum vector ------
    acc = sample[:, 0:128]
    for j in range(1, tile // 128):                       # static unrolled
        acc = acc + sample[:, j * 128:(j + 1) * 128]
    out_ref[...] = acc


def _round_up(v, m):
    return ((v + m - 1) // m) * m


def loss_1_with_logits(y_pred, y_target, pos_weight=1.0, tile_cols=16384):
    """y_pred = (stroke (B,T,1), player (B,T,1), hand (B,T,1),
                 point (B,T,3), serve (B,T,4)); y_target: (B,T,9) -> scalar."""
    ps, pp, ph, ppt, psv = y_pred
    B, T, _ = ps.shape
    N = B * T

    # Tile selection: large tiles to amortize per-grid-step overhead, but keep
    # num_tiles >= 2 (when N allows) so the "parallel" axis can shard across
    # the two v7x TensorCores.
    if N <= 256:
        tile = _round_up(max(N, 1), 128)
    else:
        tile = min(tile_cols, _round_up(-(-N // 2), 128))
    num_tiles = -(-N // tile)
    Np = num_tiles * tile

    # ---- pack into a lane-dense slab: rows = features, lanes = samples ------
    featsT = jnp.concatenate(
        [ps.reshape(N, 1).T, pp.reshape(N, 1).T, ph.reshape(N, 1).T,
         ppt.reshape(N, 3).T, psv.reshape(N, 4).T,
         y_target.reshape(N, TARGET_DIM).T],
        axis=0).astype(jnp.float32)                         # (19, N)

    slab = featsT
    pad_r = PACK_ROWS - USED_ROWS
    if pad_r > 0:
        slab = jnp.concatenate(
            [slab, jnp.zeros((pad_r, N), jnp.float32)], axis=0)   # (24, N)
    pad_c = Np - N
    if pad_c > 0:
        # Row 0 (stroke logits) padded with a large negative -> softplus == 0;
        # all other rows (incl. targets) padded with 0 -> ys == 0.
        tail = jnp.concatenate(
            [jnp.full((1, pad_c), NEG_PAD, jnp.float32),
             jnp.zeros((PACK_ROWS - 1, pad_c), jnp.float32)], axis=0)
        slab = jnp.concatenate([slab, tail], axis=1)        # (24, Np)

    kernel = functools.partial(_loss1_kernel, pos_weight=float(pos_weight),
                               tile=tile)
    partials = pl.pallas_call(
        kernel,
        out_shape=jax.ShapeDtypeStruct((1, 128 * num_tiles), jnp.float32),
        grid=(num_tiles,),
        in_specs=[pl.BlockSpec((PACK_ROWS, tile), lambda i: (0, i))],
        out_specs=pl.BlockSpec((1, 128), lambda i: (0, i)),
        compiler_params=pltpu.CompilerParams(
            dimension_semantics=("parallel",)),
    )(slab)
    return jnp.sum(partials) / N


def _reference_loss(y_pred, y_target, pos_weight=1.0):
    """Pure-JAX transcription of the PyTorch forward, for correctness check."""
    ps, pp, ph, ppt, psv = y_pred
    B, T, _ = ps.shape
    y = y_target
    y_stroke = (y.sum(-1, keepdims=True) > 0).astype(jnp.float32)
    y_player = (y[:, :, 0] == 0).astype(jnp.float32)[..., None]
    y_hand = (y[:, :, 7] == 0).astype(jnp.float32)[..., None]
    y_point = jnp.where(y[:, :, 4] == 1, 0, jnp.where(y[:, :, 5] == 1, 1, 2))
    y_serve = jnp.where(y[:, :, 2] == 1, 0,
                        jnp.where(y[:, :, 3] == 1, 1,
                                  jnp.where(y[:, :, 6] == 1, 2, 3)))

    bce_stroke = pos_weight * y_stroke * _softplus(-ps) + (1 - y_stroke) * _softplus(ps)
    bce_player = y_player * _softplus(-pp) + (1 - y_player) * _softplus(pp)
    bce_hand = y_hand * _softplus(-ph) + (1 - y_hand) * _softplus(ph)

    lse_pt = jax.scipy.special.logsumexp(ppt, axis=-1)
    tl_pt = jnp.take_along_axis(ppt, y_point[..., None], axis=-1)[..., 0]
    cce_point = lse_pt - tl_pt
    lse_sv = jax.scipy.special.logsumexp(psv, axis=-1)
    tl_sv = jnp.take_along_axis(psv, y_serve[..., None], axis=-1)[..., 0]
    cce_serve = lse_sv - tl_sv

    sample_loss = bce_stroke + y_stroke * (
        bce_player + bce_hand + cce_point[..., None] + cce_serve[..., None])
    return sample_loss.sum() / (B * T)


def _make_inputs(key, B, T):
    k1, k2, k3, k4, k5, k6, k7 = jax.random.split(key, 7)
    smap = jnp.asarray(COMB_NO_VOID_SEQUENCE_MAP)
    class_idx = jax.random.randint(k1, (B, T), 0, smap.shape[0])
    stroke_mask = (jax.random.uniform(k2, (B, T)) < 0.7).astype(jnp.float32)
    y_target = smap[class_idx] * stroke_mask[..., None]              # (B,T,9)
    y_pred = (
        jax.random.normal(k3, (B, T, 1), dtype=jnp.float32),         # stroke
        jax.random.normal(k4, (B, T, 1), dtype=jnp.float32),         # player
        jax.random.normal(k5, (B, T, 1), dtype=jnp.float32),         # hand
        jax.random.normal(k6, (B, T, 3), dtype=jnp.float32),         # point
        jax.random.normal(k7, (B, T, 4), dtype=jnp.float32),         # serve
    )
    return y_pred, y_target


if __name__ == "__main__":
    key = jax.random.PRNGKey(0)
    k_a, k_b = jax.random.split(key)

    # Small single-tile case (B=2, T=8 -> N=16, padded to 128 lanes).
    y_pred_a, y_target_a = _make_inputs(k_a, 2, 8)
    loss_a = jax.block_until_ready(loss_1_with_logits(y_pred_a, y_target_a))
    ref_a = jax.block_until_ready(_reference_loss(y_pred_a, y_target_a))
    assert jnp.allclose(loss_a, ref_a, rtol=1e-4, atol=1e-4), (loss_a, ref_a)

    # Multi-tile case (B=3, T=100 -> N=300, 2 tiles, exercises column padding).
    y_pred_b, y_target_b = _make_inputs(k_b, 3, 100)
    loss_b = jax.block_until_ready(loss_1_with_logits(y_pred_b, y_target_b))
    ref_b = jax.block_until_ready(_reference_loss(y_pred_b, y_target_b))
    assert jnp.allclose(loss_b, ref_b, rtol=1e-4, atol=1e-4), (loss_b, ref_b)

    print("KERNEL_OK")
</pallas_src>

<mosaic_0001>
module attributes {stable_mosaic.version = 11 : i64} {
  func.func @_loss1_kernel(%arg0: i32, %arg1: memref<24x128xf32, #tpu.memory_space<vmem>>, %arg2: memref<1x128xf32, #tpu.memory_space<vmem>>) attributes {dimension_semantics = [#tpu.dimension_semantics<parallel>], iteration_bounds = array<i64: 1>, scalar_prefetch = 0 : i64, scratch_operands = 0 : i64, tpu.core_type = #tpu.core_type<tc>, window_params = [{transform_indices = @transform_0, window_bounds = array<i64: 24, 128>}, {transform_indices = @transform_1, window_bounds = array<i64: 1, 128>}]} {
    %c0 = arith.constant 0 : index
    %c0_0 = arith.constant 0 : index
    %0 = vector.load %arg1[%c0, %c0_0] : memref<24x128xf32, #tpu.memory_space<vmem>>, vector<3x128xf32>
    %c3 = arith.constant 3 : index
    %c0_1 = arith.constant 0 : index
    %1 = vector.load %arg1[%c3, %c0_1] : memref<24x128xf32, #tpu.memory_space<vmem>>, vector<3x128xf32>
    %c6 = arith.constant 6 : index
    %c0_2 = arith.constant 0 : index
    %2 = vector.load %arg1[%c6, %c0_2] : memref<24x128xf32, #tpu.memory_space<vmem>>, vector<4x128xf32>
    %c10 = arith.constant 10 : index
    %c0_3 = arith.constant 0 : index
    %3 = vector.load %arg1[%c10, %c0_3] : memref<24x128xf32, #tpu.memory_space<vmem>>, vector<9x128xf32>
    %cst = arith.constant 0.000000e+00 : f32
    %4 = vector.broadcast %cst : f32 to vector<9x128xf32>
    %5 = arith.cmpf oeq, %3, %4 : vector<9x128xf32>
    %6 = arith.extui %5 : vector<9x128xi1> to vector<9x128xi32>
    %7 = arith.sitofp %6 : vector<9x128xi32> to vector<9x128xf32>
    %cst_4 = arith.constant 1.000000e+00 : f32
    %8 = vector.broadcast %cst_4 : f32 to vector<9x128xf32>
    %9 = arith.cmpf oeq, %3, %8 : vector<9x128xf32>
    %10 = arith.extui %9 : vector<9x128xi1> to vector<9x128xi32>
    %11 = arith.sitofp %10 : vector<9x128xi32> to vector<9x128xf32>
    %cst_5 = arith.constant dense<0.000000e+00> : vector<128xf32>
    %12 = vector.multi_reduction <add>, %3, %cst_5 [0] : vector<9x128xf32> to vector<128xf32>
    %13 = vector.shape_cast %12 : vector<128xf32> to vector<1x128xf32>
    %cst_6 = arith.constant 0.000000e+00 : f32
    %14 = vector.broadcast %cst_6 : f32 to vector<1x128xf32>
    %15 = arith.cmpf ogt, %13, %14 : vector<1x128xf32>
    %16 = arith.extui %15 : vector<1x128xi1> to vector<1x128xi32>
    %17 = arith.sitofp %16 : vector<1x128xi32> to vector<1x128xf32>
    %18 = vector.extract_strided_slice %7 {offsets = [0, 0], sizes = [1, 128], strides = [1, 1]} : vector<9x128xf32> to vector<1x128xf32>
    %19 = vector.extract_strided_slice %7 {offsets = [7, 0], sizes = [1, 128], strides = [1, 1]} : vector<9x128xf32> to vector<1x128xf32>
    %20 = vector.extract_strided_slice %11 {offsets = [2, 0], sizes = [1, 128], strides = [1, 1]} : vector<9x128xf32> to vector<1x128xf32>
    %21 = vector.extract_strided_slice %11 {offsets = [3, 0], sizes = [1, 128], strides = [1, 1]} : vector<9x128xf32> to vector<1x128xf32>
    %22 = vector.extract_strided_slice %11 {offsets = [4, 0], sizes = [1, 128], strides = [1, 1]} : vector<9x128xf32> to vector<1x128xf32>
    %23 = vector.extract_strided_slice %11 {offsets = [5, 0], sizes = [1, 128], strides = [1, 1]} : vector<9x128xf32> to vector<1x128xf32>
    %24 = vector.extract_strided_slice %11 {offsets = [6, 0], sizes = [1, 128], strides = [1, 1]} : vector<9x128xf32> to vector<1x128xf32>
    %cst_7 = arith.constant 0.000000e+00 : f32
    %25 = vector.broadcast %cst_7 : f32 to vector<3x128xf32>
    %26 = arith.maximumf %0, %25 : vector<3x128xf32>
    %27 = math.absf %0 : vector<3x128xf32>
    %cst_8 = arith.constant 0.000000e+00 : f32
    %28 = vector.broadcast %cst_8 : f32 to vector<3x128xf32>
    %29 = arith.subf %28, %27 : vector<3x128xf32>
    %30 = math.exp %29 : vector<3x128xf32>
    %31 = math.log1p %30 : vector<3x128xf32>
    %32 = arith.addf %26, %31 : vector<3x128xf32>
    %33 = vector.extract_strided_slice %32 {offsets = [0, 0], sizes = [1, 128], strides = [1, 1]} : vector<3x128xf32> to vector<1x128xf32>
    %34 = vector.extract_strided_slice %0 {offsets = [0, 0], sizes = [1, 128], strides = [1, 1]} : vector<3x128xf32> to vector<1x128xf32>
    %35 = arith.mulf %17, %34 : vector<1x128xf32>
    %36 = arith.subf %33, %35 : vector<1x128xf32>
    %37 = vector.extract_strided_slice %32 {offsets = [1, 0], sizes = [1, 128], strides = [1, 1]} : vector<3x128xf32> to vector<1x128xf32>
    %38 = vector.extract_strided_slice %0 {offsets = [1, 0], sizes = [1, 128], strides = [1, 1]} : vector<3x128xf32> to vector<1x128xf32>
    %39 = arith.mulf %18, %38 : vector<1x128xf32>
    %40 = arith.subf %37, %39 : vector<1x128xf32>
    %41 = vector.extract_strided_slice %32 {offsets = [2, 0], sizes = [1, 128], strides = [1, 1]} : vector<3x128xf32> to vector<1x128xf32>
    %42 = vector.extract_strided_slice %0 {offsets = [2, 0], sizes = [1, 128], strides = [1, 1]} : vector<3x128xf32> to vector<1x128xf32>
    %43 = arith.mulf %19, %42 : vector<1x128xf32>
    %44 = arith.subf %41, %43 : vector<1x128xf32>
    %45 = arith.addf %40, %44 : vector<1x128xf32>
    %cst_9 = arith.constant dense<0xFF800000> : vector<128xf32>
    %46 = vector.multi_reduction <maximumf>, %1, %cst_9 [0] : vector<3x128xf32> to vector<128xf32>
    %47 = vector.shape_cast %46 : vector<128xf32> to vector<1x128xf32>
    %48 = vector.broadcast %47 : vector<1x128xf32> to vector<3x128xf32>
    %49 = arith.subf %1, %48 : vector<3x128xf32>
    %50 = math.exp %49 : vector<3x128xf32>
    %cst_10 = arith.constant dense<0.000000e+00> : vector<128xf32>
    %51 = vector.multi_reduction <add>, %50, %cst_10 [0] : vector<3x128xf32> to vector<128xf32>
    %52 = vector.shape_cast %51 : vector<128xf32> to vector<1x128xf32>
    %53 = math.log %52 : vector<1x128xf32>
    %54 = arith.addf %47, %53 : vector<1x128xf32>
    %cst_11 = arith.constant 1.000000e+00 : f32
    %55 = vector.broadcast %cst_11 : f32 to vector<1x128xf32>
    %56 = arith.subf %55, %22 : vector<1x128xf32>
    %57 = arith.mulf %56, %23 : vector<1x128xf32>
    %cst_12 = arith.constant 1.000000e+00 : f32
    %58 = vector.broadcast %cst_12 : f32 to vector<1x128xf32>
    %59 = arith.subf %58, %22 : vector<1x128xf32>
    %cst_13 = arith.constant 1.000000e+00 : f32
    %60 = vector.broadcast %cst_13 : f32 to vector<1x128xf32>
    %61 = arith.subf %60, %23 : vector<1x128xf32>
    %62 = arith.mulf %59, %61 : vector<1x128xf32>
    %63 = vector.extract_strided_slice %1 {offsets = [0, 0], sizes = [1, 128], strides = [1, 1]} : vector<3x128xf32> to vector<1x128xf32>
    %64 = arith.mulf %22, %63 : vector<1x128xf32>
    %65 = vector.extract_strided_slice %1 {offsets = [1, 0], sizes = [1, 128], strides = [1, 1]} : vector<3x128xf32> to vector<1x128xf32>
    %66 = arith.mulf %57, %65 : vector<1x128xf32>
    %67 = arith.addf %64, %66 : vector<1x128xf32>
    %68 = vector.extract_strided_slice %1 {offsets = [2, 0], sizes = [1, 128], strides = [1, 1]} : vector<3x128xf32> to vector<1x128xf32>
    %69 = arith.mulf %62, %68 : vector<1x128xf32>
    %70 = arith.addf %67, %69 : vector<1x128xf32>
    %71 = arith.subf %54, %70 : vector<1x128xf32>
    %cst_14 = arith.constant dense<0xFF800000> : vector<128xf32>
    %72 = vector.multi_reduction <maximumf>, %2, %cst_14 [0] : vector<4x128xf32> to vector<128xf32>
    %73 = vector.shape_cast %72 : vector<128xf32> to vector<1x128xf32>
    %74 = vector.broadcast %73 : vector<1x128xf32> to vector<4x128xf32>
    %75 = arith.subf %2, %74 : vector<4x128xf32>
    %76 = math.exp %75 : vector<4x128xf32>
    %cst_15 = arith.constant dense<0.000000e+00> : vector<128xf32>
    %77 = vector.multi_reduction <add>, %76, %cst_15 [0] : vector<4x128xf32> to vector<128xf32>
    %78 = vector.shape_cast %77 : vector<128xf32> to vector<1x128xf32>
    %79 = math.log %78 : vector<1x128xf32>
    %80 = arith.addf %73, %79 : vector<1x128xf32>
    %cst_16 = arith.constant 1.000000e+00 : f32
    %81 = vector.broadcast %cst_16 : f32 to vector<1x128xf32>
    %82 = arith.subf %81, %20 : vector<1x128xf32>
    %83 = arith.mulf %82, %21 : vector<1x128xf32>
    %cst_17 = arith.constant 1.000000e+00 : f32
    %84 = vector.broadcast %cst_17 : f32 to vector<1x128xf32>
    %85 = arith.subf %84, %20 : vector<1x128xf32>
    %cst_18 = arith.constant 1.000000e+00 : f32
    %86 = vector.broadcast %cst_18 : f32 to vector<1x128xf32>
    %87 = arith.subf %86, %21 : vector<1x128xf32>
    %88 = arith.mulf %85, %87 : vector<1x128xf32>
    %89 = arith.mulf %88, %24 : vector<1x128xf32>
    %cst_19 = arith.constant 1.000000e+00 : f32
    %90 = vector.broadcast %cst_19 : f32 to vector<1x128xf32>
    %91 = arith.subf %90, %20 : vector<1x128xf32>
    %cst_20 = arith.constant 1.000000e+00 : f32
    %92 = vector.broadcast %cst_20 : f32 to vector<1x128xf32>
    %93 = arith.subf %92, %21 : vector<1x128xf32>
    %94 = arith.mulf %91, %93 : vector<1x128xf32>
    %cst_21 = arith.constant 1.000000e+00 : f32
    %95 = vector.broadcast %cst_21 : f32 to vector<1x128xf32>
    %96 = arith.subf %95, %24 : vector<1x128xf32>
    %97 = arith.mulf %94, %96 : vector<1x128xf32>
    %98 = vector.extract_strided_slice %2 {offsets = [0, 0], sizes = [1, 128], strides = [1, 1]} : vector<4x128xf32> to vector<1x128xf32>
    %99 = arith.mulf %20, %98 : vector<1x128xf32>
    %100 = vector.extract_strided_slice %2 {offsets = [1, 0], sizes = [1, 128], strides = [1, 1]} : vector<4x128xf32> to vector<1x128xf32>
    %101 = arith.mulf %83, %100 : vector<1x128xf32>
    %102 = arith.addf %99, %101 : vector<1x128xf32>
    %103 = vector.extract_strided_slice %2 {offsets = [2, 0], sizes = [1, 128], strides = [1, 1]} : vector<4x128xf32> to vector<1x128xf32>
    %104 = arith.mulf %89, %103 : vector<1x128xf32>
    %105 = arith.addf %102, %104 : vector<1x128xf32>
    %106 = vector.extract_strided_slice %2 {offsets = [3, 0], sizes = [1, 128], strides = [1, 1]} : vector<4x128xf32> to vector<1x128xf32>
    %107 = arith.mulf %97, %106 : vector<1x128xf32>
    %108 = arith.addf %105, %107 : vector<1x128xf32>
    %109 = arith.subf %80, %108 : vector<1x128xf32>
    %110 = arith.addf %45, %71 : vector<1x128xf32>
    %111 = arith.addf %110, %109 : vector<1x128xf32>
    %112 = arith.mulf %17, %111 : vector<1x128xf32>
    %113 = arith.addf %36, %112 : vector<1x128xf32>
    %c0_22 = arith.constant 0 : index
    %c0_23 = arith.constant 0 : index
    %114 = vector.load %arg2[%c0_22, %c0_23] : memref<1x128xf32, #tpu.memory_space<vmem>>, vector<1x128xf32>
    tpu.vector_store %arg2[%c0_22, %c0_23], %113 {strides = array<i32>} : memref<1x128xf32, #tpu.memory_space<vmem>>, vector<1x128xf32>,
    return
  }
  func.func @transform_0(%arg0: i32) -> (i32, i32) {
    %c0_i32 = arith.constant 0 : i32
    %c0_i32_0 = arith.constant 0 : i32
    return %c0_i32, %arg0 : i32, i32
  }
  func.func @transform_1(%arg0: i32) -> (i32, i32) {
    %c0_i32 = arith.constant 0 : i32
    %c0_i32_0 = arith.constant 0 : i32
    return %c0_i32, %arg0 : i32, i32
  }
}

</mosaic_0001>

<bundles_post_ra>
// kernel: tpu_custom_call.1
= control target key start
LH: loop header
LB: loop body
LE: loop exit
PB: predicated region body
PF: predicated region fallthrough
CT: control target
= control target key end

     0   :  { %6 = vsyncpa [#allocation3], 0  ;;  %s346_s0 = inlined_call_operand.hbm [shape: f32[24,128], index: 0, kind: input, shape index: {}]   ;;  %s347_s1 = inlined_call_operand.hbm [shape: f32[1,128], index: 1, kind: output, shape index: {}]  }
   0x1   :  { %7 = vsyncpa [#allocation4], 0  ;;  %s264_s6 = smov [#allocation2]   ;;  %s216_s10 = scalar_lea.hbm %s346_s0, 384 }
   0x2   :  { %s13_s7 = sshll.u32 %s264_s6, 4  ;;  %p217_p0 = scmp.ne.s32.totalorder %s346_s0, %s216_s10  ;;  %s14_s7 = int_to_ptr.vmem [resolvable:$true] %s13_s7 }
   0x3   :  { %p220_p1 = scmp.lt.u32.totalorder %s216_s10, %s346_s0 }
   0x5   :  { %p222_p2 = pnand %p220_p1, %p217_p0 }
   0x7   :  { %225 = shalt.err (!%p222_p2)
}
   0x8   :  { %s226_s15 = scalar_lea.vmem %s14_s7, 384  ;;  %p231_p4 = scmp.lt.s32.totalorder %s14_s7, %s14_s7 }
   0x9   :  { %p227_p3 = scmp.ne.s32.totalorder %s14_s7, %s226_s15  ;;  %p232_p5 = scmp.lt.s32.totalorder %s226_s15, %s226_s15 }
   0xb   :  { %p233_p6 = por %p232_p5, %p231_p4 }
   0xd   :  { %p234_p7 = pnand %p233_p6, %p227_p3 }
   0xf   :  { %237 = shalt.err (!%p234_p7)
}
  0x10   :  { %s265_s16 = smov 128   ;;  %s266_s17 = smov 8  }
  0x11   :  { %19 = dma.hbm_to_vmem [thread:$0]  %s346_s0, 384, %s14_s7, [#allocation3], %s265_s16, %s265_s16, %s266_s17  }
  0x12   :  { %260 = dma.done.wait [#allocation3], 384  }
  0x13   :  { %261 = vsyncadd [#allocation3], 4294966912  ;;  %v291_v0 = vld [vmem:[#allocation2] sm:$0x7]  ;;  %v293_v1 = vld [vmem:[#allocation2 + $0x3] sm:$0x7] }
  0x14   :  { %v47_v2 = vand.u32 2147483647, %v291_v0  ;;  %vm82_vm0 = vcmask 1042432   ;;  %v298_v6 = vld [vmem:[#allocation2 + $0x6] sm:$0xf]  ;;  %vm125_vm1 = vcmask 1043456  }
  0x15   :  { %v83_v3 = vsel %vm82_vm0, %v293_v1, -inf  ;;  %v126_v10 = vsel %vm125_vm1, %v298_v6, -inf  ;;  %v27_v26 = vld [vmem:[#allocation2 + $0x12] sm:$0x1]  ;;  %vm34_vm2 = vcmask 1040384   ;;  %v26_v27 = vld [vmem:[#allocation2 + $0xa] sm:$0xff] }
  0x16   :  { %v48_v4 = vsub.f32 0.0, %v47_v2  ;;  %v84_v5 = vrot.slane %v83_v3, 4  ;;  %v127_v11 = vrot.slane %v126_v10, 4  ;;  %v35_v28 = vsel %vm34_vm2, %v27_v26, 0.0  ;;  %s268_s0 = smov [#allocation5]  }
  0x17   :  { %vm31_vm3 = vcmp.eq.f32.partialorder %v26_v27, 1.0  ;;  %v36_v31 = vadd.f32 %v35_v28, %v26_v27  ;;  %v267_v33 = vmov 0.0   ;;  %vm28_vm4 = vcmp.eq.f32.partialorder %v26_v27, 0.0  ;;  %s187_s20 = sshll.u32 %s268_s0, 4  ;;  %s188_s20 = int_to_ptr.vmem [resolvable:$true] %s187_s20 }
  0x18   :  { %v85_v7 = vmax.f32 %v83_v3, %v84_v5  ;;  %v49_v8 = vmul.f32 1.442695, %v48_v4  ;;  %v128_v13 = vmax.f32 %v126_v10, %v127_v11  ;;  %v197_v34 = vsel %vm31_vm3, 1.0, %v267_v33  ;;  %s238_s21 = scalar_lea.vmem %s188_s20, 16  ;;  %s242_s22 = scalar_lea.vmem %s188_s20, 32 }
  0x19   :  { %v37_v38 = vrot.slane %v36_v31, 4  ;;  %v103_v40 = vsub.f32 1.0, %v197_v34  ;;  %v105_v47 = vrot.slane %v197_v34, 1  ;;  %v71_v49 = vrot.slane %v291_v0, 3  ;;  %p239_p8 = scmp.ne.s32.totalorder %s188_s20, %s238_s21  ;;  %p243_p9 = scmp.lt.s32.totalorder %s188_s20, %s188_s20 }
  0x1a   :  { %v86_v9 = vrot.slane %v85_v7, 2  ;;  %204 = vpow2.f32 %v49_v8  ;;  %v129_v15 = vrot.slane %v128_v13, 2  ;;  %v196_v52 = vsel %vm28_vm4, 1.0, %v267_v33  ;;  %p244_p10 = scmp.lt.s32.totalorder %s242_s22, %s238_s21 }
  0x1b   :  { %v38_v48 = vadd.f32 %v37_v38, %v36_v31  ;;  %v46_v53 = vmax.f32 %v291_v0, 0.0  ;;  %v64_v54 = vrot.slane %v291_v0, 1  ;;  %v109_v55 = vrot.slane %v103_v40, 1 }
  0x1c   :  { %v87_v12 = vmax.f32 %v85_v7, %v86_v9  ;;  %v130_v17 = vmax.f32 %v128_v13, %v129_v15  ;;  %v107_v61 = vmul.f32 %v105_v47, %v103_v40  ;;  %v113_v62 = vrot.slane %v293_v1, 4  ;;  %p245_p11 = por %p244_p10, %p243_p9 }
  0x1d   :  { %v116_v63 = vrot.slane %v293_v1, 5  ;;  %v39_v2 = vrot.slane %v38_v48, 2  ;;  %v73_v3 = vmul.f32 %v196_v52, %v71_v49  ;;  %v111_v5 = vmul.f32 %v109_v55, %v103_v40 }
  0x1e   :  { %v88_v14 = vrot.slane %v87_v12, 1  ;;  %v131_v20 = vrot.slane %v130_v17, 1  ;;  %v146_v7 = vrot.slane %v197_v34, 4  ;;  %v153_v8 = vrot.slane %v298_v6, 6  ;;  %p246_p12 = pnand %p245_p11, %p239_p8 }
  0x1f   :  { %v156_v9 = vrot.slane %v298_v6, 7  ;;  %v115_v13 = vmul.f32 %v197_v34, %v113_v62  ;;  %v120_v15 = vrot.slane %v293_v1, 6 }
  0x20   :  { %v302_v16 = vmax.f32 %v87_v12, %v88_v14  ;;  %v306_v21 = vmax.f32 %v130_v17, %v131_v20  ;;  %v66_v12 = vmul.f32 %v196_v52, %v64_v54  ;;  %v118_v14 = vmul.f32 %v116_v63, %v107_v61 }
  0x21   :  { %v40_v17 = vadd.f32 %v39_v2, %v38_v48  ;;  %v149_v20 = vrot.slane %v103_v40, 4  ;;  %v122_v27 = vmul.f32 %v120_v15, %v111_v5 }
  0x22   :  { %v90_v18 = vsub.f32 %v293_v1, %v302_v16  ;;  %v133_v23 = vsub.f32 %v298_v6, %v306_v21  ;;  %v119_v26 = vadd.f32 %v118_v14, %v115_v13  ;;  %v68_v31 = vrot.slane %v66_v12, 7 }
  0x23   :  { %v41_v28 = vrot.slane %v40_v17, 1 }
  0x24   :  { %v91_v19 = vmul.f32 1.442695, %v90_v18  ;;  %v205_v22 = vpop.eup %204  ;;  %v134_v24 = vmul.f32 1.442695, %v133_v23  ;;  %v75_v18 = vrot.slane %v73_v3, 5  ;;  %v148_v23 = vmul.f32 %v146_v7, %v111_v5 }
  0x25   :  { %v51_v25 = vadd.f32 1.0, %v205_v22  ;;  %v54_v35 = vmul.f32 -0.5, %v205_v22  ;;  %v57_v46 = vand.u32 2147483647, %v205_v22  ;;  %v123_v38 = vadd.f32 %v122_v27, %v119_v26 }
  0x26   :  { %206 = vpow2.f32 %v91_v19  ;;  %v160_v1 = vmul.f32 %v148_v23, %v298_v6 }
  0x27   :  { %208 = vpow2.f32 %v134_v24  ;;  %v55_v42 = vadd.f32 1.0, %v54_v35  ;;  %vm317_vm5 = vcmp.lt.f32.partialorder %v57_v46, 0.0004427343  ;;  %v155_v24 = vmul.f32 %v197_v34, %v153_v8 }
  0x28   :  { %210 = vlog2.f32 %v51_v25  ;;  %v158_v25 = vmul.f32 %v156_v9, %v107_v61 }
  0x29   :  { %v56_v57 = vmul.f32 %v205_v22, %v55_v42 }
  0x2a   :  { %v159_v35 = vadd.f32 %v158_v25, %v155_v24 }
  0x30   :  { %v207_v29 = vpop.eup %206 }
  0x31   :  { %v93_v30 = vsel %vm82_vm0, %v207_v29, 0.0  ;;  %v209_v37 = vpop.eup %208  ;;  %v151_v29 = vmul.f32 %v149_v20, %v111_v5 }
  0x32   :  { %v94_v32 = vrot.slane %v93_v30, 4  ;;  %v136_v41 = vsel %vm125_vm1, %v209_v37, 0.0  ;;  %v211_v45 = vpop.eup %210 }
  0x33   :  { %v137_v44 = vrot.slane %v136_v41, 4  ;;  %v53_v56 = vmul.f32 0.6931472, %v211_v45 }
  0x34   :  { %v95_v36 = vadd.f32 %v94_v32, %v93_v30  ;;  %v162_v30 = vrot.slane %v298_v6, 1 }
  0x35   :  { %v138_v51 = vadd.f32 %v137_v44, %v136_v41  ;;  %v59_v10 = vsel %vm317_vm5, %v56_v57, %v53_v56 }
  0x36   :  { %v96_v39 = vrot.slane %v95_v36, 2  ;;  %v60_v22 = vadd.f32 %v59_v10, %v46_v53  ;;  %v164_v40 = vmul.f32 %v162_v30, %v151_v29 }
  0x37   :  { %v139_v59 = vrot.slane %v138_v51, 2 }
  0x38   :  { %v97_v43 = vadd.f32 %v96_v39, %v95_v36  ;;  %v77_v32 = vsub.f32 %v60_v22, %v75_v18  ;;  %v42_v39 = vadd.f32 %v41_v28, %v40_v17  ;;  %v70_v41 = vsub.f32 %v60_v22, %v68_v31 }
  0x39   :  { %v140_v4 = vadd.f32 %v139_v59, %v138_v51 }
  0x3a   :  { %v98_v50 = vrot.slane %v97_v43, 1  ;;  %v79_v34 = vrot.slane %v77_v32, 1  ;;  %vm43_vm6 = vcmp.gt.f32.partialorder %v42_v39, 0.0 }
  0x3b   :  { %v141_v11 = vrot.slane %v140_v4, 1  ;;  %v198_v6 = vsel %vm43_vm6, 1.0, %v267_v33 }
  0x3c   :  { %v99_v58 = vadd.f32 %v98_v50, %v97_v43  ;;  %v161_v43 = vadd.f32 %v160_v1, %v159_v35  ;;  %v81_v46 = vadd.f32 %v79_v34, %v70_v41  ;;  %v61_v53 = vmul.f32 %v198_v6, %v291_v0 }
  0x3d   :  { %v142_v19 = vadd.f32 %v141_v11, %v140_v4 }
  0x3e   :  { %212 = vlog2.f32 %v99_v58  ;;  %v165_v48 = vadd.f32 %v164_v40, %v161_v43  ;;  %v62_v56 = vsub.f32 %v60_v22, %v61_v53 }
  0x3f   :  { %214 = vlog2.f32 %v142_v19 }
  0x48   :  { %v213_v36 = vpop.eup %212 }
  0x49   :  { %v101_v37 = vmul.f32 0.6931472, %v213_v36  ;;  %v215_v45 = vpop.eup %214 }
  0x4a   :  { %v144_v47 = vmul.f32 0.6931472, %v215_v45 }
  0x4b   :  { %v102_v42 = vadd.f32 %v101_v37, %v302_v16 }
  0x4c   :  { %v145_v50 = vadd.f32 %v144_v47, %v306_v21 }
  0x4d   :  { %v124_v44 = vsub.f32 %v102_v42, %v123_v38 }
  0x4e   :  { %v166_v51 = vsub.f32 %v145_v50, %v165_v48 }
  0x4f   :  { %v168_v49 = vrot.slane %v124_v44, 3 }
  0x50   :  { %v172_v54 = vrot.slane %v166_v51, 1 }
  0x51   :  { %v170_v52 = vadd.f32 %v168_v49, %v81_v46 }
  0x53   :  { %v174_v55 = vadd.f32 %v172_v54, %v170_v52 }
  0x55   :  { %v175_v16 = vmul.f32 %v198_v6, %v174_v55 }
  0x57   :  { %v177_v57 = vrot.slane %v175_v16, 1 }
  0x59   :  { %v179_v58 = vadd.f32 %v177_v57, %v62_v56 }
  0x5b   :  { %180 = vst [vmem:[#allocation5] sm:$0x1] %v179_v58 }
  0x5c   :  { %249 = shalt.err (!%p246_p12)
}
  0x5d   :  { %s250_s25 = scalar_lea.hbm %s347_s1, 16 }
  0x5e   :  { %p251_p13 = scmp.ne.s32.totalorder %s347_s1, %s250_s25  ;;  %p254_p0 = scmp.lt.u32.totalorder %s250_s25, %s347_s1 }
  0x60   :  { %p256_p1 = pnand %p254_p0, %p251_p13 }
  0x62   :  { %259 = shalt.err (!%p256_p1)
}
  0x63   :  { %190 = dma.vmem_to_hbm [thread:$0]  %s188_s20, 16, %s347_s1, [#allocation4]  }
  0x64   :  { %262 = dma.done.wait [#allocation4], 16  }
  0x65   :  { %263 = vsyncadd [#allocation4], 4294967280 }
  0x66   :  { %194 = vsyncpa [#allocation3], 1 }
  0x67   :  { %195 = vsyncpa [#allocation4], 1 }

</bundles_post_ra>
